<compile_context>
chip_gen: v5e
topology: v5e:2x2
jax: 0.10.0
libtpu: 0.0.40
codegen_flags: <defaults>
</compile_context>

<pallas_src>
import jax
import jax.numpy as jnp
from jax.experimental import pallas as pl
from jax.experimental.pallas import tpu as pltpu

# CartPole-v1 dimensions (observation_space.shape[0] == 4, action_space.n == 2)
STATE_DIM = 4
HIDDEN_DIM = 128
ACTION_DIM = 2

LANES = 128      # fc2 compute width in VMEM (lane-dense for the MXU result)
OUT_BLOCK = 8    # HBM-facing output width (>= ACTION_DIM); wrapper slices :2

# Packed parameter slab row layout (all rows are 128 lanes wide, f32):
_W1_ROW = 0                       # rows [  0,   8): w1 in rows 0..3, rest zero
_B1_ROW = _W1_ROW + 8             # rows [  8,  16): b1 in row 8, rest zero
_W2_ROW = _B1_ROW + 8             # rows [ 16, 144): w2 (128, 128), cols >=2 zero
_B2_ROW = _W2_ROW + HIDDEN_DIM    # rows [144, 152): b2 in row 144, rest zero
_PARAM_ROWS = _B2_ROW + 8         # 152 rows total (multiple of 8)


def _cdiv(a, b):
    return (a + b - 1) // b


def _round_up(n, m):
    return ((n + m - 1) // m) * m


def qvaluenet_kernel(x_ref, p_ref, o_ref):
    # Static, sublane-aligned slices into the VMEM-resident parameter slab.
    w1 = p_ref[_W1_ROW:_W1_ROW + STATE_DIM, :]     # (4,   128)
    b1 = p_ref[_B1_ROW:_B1_ROW + 1, :]             # (1,   128)
    w2 = p_ref[_W2_ROW:_W2_ROW + HIDDEN_DIM, :]    # (128, 128)
    b2 = p_ref[_B2_ROW:_B2_ROW + 1, :]             # (1,   128)

    # fc1 + ReLU: MXU matmul (K=4 is exact; MXU pads internally), VPU bias+max.
    # For bit-level parity with PyTorch fp32 matmuls one can additionally pass
    # precision=jax.lax.Precision.HIGHEST to both dots.
    h = jnp.dot(x_ref[...], w1, preferred_element_type=jnp.float32) + b1
    h = jnp.maximum(h, 0.0)
    # fc2: computed full 128 lanes wide in VMEM (columns >= ACTION_DIM are
    # exactly zero because both w2 pad columns and b2 pad lanes are zero)...
    out = jnp.dot(h, w2, preferred_element_type=jnp.float32) + b2
    # ...but only the first OUT_BLOCK lanes are written back to HBM.
    o_ref[...] = out[:, :OUT_BLOCK].astype(o_ref.dtype)


def pack_params(w1, b1, w2, b2):
    """Pack fc1/fc2 weights & biases into one zero-padded (152, 128) f32 slab.

    w1: (STATE_DIM, HIDDEN_DIM)   b1: (HIDDEN_DIM,) or (1, HIDDEN_DIM)
    w2: (HIDDEN_DIM, ACTION_DIM)  b2: (ACTION_DIM,) or (1, ACTION_DIM)
    (Weights are (in, out), i.e. the transpose of PyTorch's Linear.weight.)
    """
    w1 = jnp.asarray(w1, jnp.float32).reshape(STATE_DIM, HIDDEN_DIM)
    b1 = jnp.asarray(b1, jnp.float32).reshape(1, HIDDEN_DIM)
    w2 = jnp.asarray(w2, jnp.float32).reshape(HIDDEN_DIM, ACTION_DIM)
    b2 = jnp.asarray(b2, jnp.float32).reshape(1, ACTION_DIM)

    slab = jnp.zeros((_PARAM_ROWS, LANES), jnp.float32)
    slab = slab.at[_W1_ROW:_W1_ROW + STATE_DIM, :HIDDEN_DIM].set(w1)
    slab = slab.at[_B1_ROW:_B1_ROW + 1, :HIDDEN_DIM].set(b1)
    slab = slab.at[_W2_ROW:_W2_ROW + HIDDEN_DIM, :ACTION_DIM].set(w2)
    slab = slab.at[_B2_ROW:_B2_ROW + 1, :ACTION_DIM].set(b2)
    return slab


def qvalue_net_forward_packed(x, params, *, batch_tile=1024):
    """x: (B, STATE_DIM) f32, params: packed (152, 128) slab.
    Returns (B, ACTION_DIM) f32."""
    B = x.shape[0]
    # Batch tile: multiple of 8 (f32 sublane), at most batch_tile rows, and
    # capped at ceil(B/2) so large batches always produce a >=2-step parallel
    # grid (keeps both TensorCores busy on v7x; harmless on v5e/v6e).
    tb = max(8, min(batch_tile, _round_up(_cdiv(B, 2), 8)))
    b_pad = _round_up(B, tb)
    grid = (b_pad // tb,)

    x = x.astype(jnp.float32)
    if b_pad != B:
        # Only the batch dim is padded; the feature dim (4) stays unpadded.
        x_in = jnp.zeros((b_pad, STATE_DIM), jnp.float32).at[:B, :].set(x)
    else:
        x_in = x

    flops = 2 * b_pad * (STATE_DIM * HIDDEN_DIM + HIDDEN_DIM * LANES)
    bytes_accessed = (b_pad * STATE_DIM + params.size + b_pad * OUT_BLOCK) * 4

    out = pl.pallas_call(
        qvaluenet_kernel,
        out_shape=jax.ShapeDtypeStruct((b_pad, OUT_BLOCK), jnp.float32),
        grid=grid,
        in_specs=[
            # Activation stream: one batch tile per grid step; last block dim
            # equals the full array dim (4) -> contiguous DMA, no feature pad.
            pl.BlockSpec((tb, STATE_DIM), lambda i: (i, 0)),
            # Packed params: constant block index -> fetched once, VMEM-resident
            # across every grid step.
            pl.BlockSpec((_PARAM_ROWS, LANES), lambda i: (0, 0)),
        ],
        # Narrow HBM-facing output block (last block dim == full array dim).
        out_specs=pl.BlockSpec((tb, OUT_BLOCK), lambda i: (i, 0)),
        compiler_params=pltpu.CompilerParams(
            dimension_semantics=("parallel",)),  # shards across both TCs on v7x
        cost_estimate=pl.CostEstimate(
            flops=flops, transcendentals=0, bytes_accessed=bytes_accessed),
    )(x_in, params)

    # Free layout plumbing outside the kernel: drop batch / lane padding.
    return out[:B, :ACTION_DIM]


def qvalue_net_forward(x, w1, b1, w2, b2, *, batch_tile=1024):
    """Convenience wrapper (packs params every call; prefer packing once)."""
    return qvalue_net_forward_packed(
        x, pack_params(w1, b1, w2, b2), batch_tile=batch_tile)


def init_params(key):
    """Deterministic init matching torch.nn.Linear's default:
    U(-1/sqrt(fan_in), 1/sqrt(fan_in)) for both weight and bias."""
    k1, k2, k3, k4 = jax.random.split(key, 4)
    bound1 = 1.0 / jnp.sqrt(STATE_DIM)
    bound2 = 1.0 / jnp.sqrt(HIDDEN_DIM)
    # Stored as (in, out) == W.T relative to PyTorch's (out, in).
    w1 = jax.random.uniform(k1, (STATE_DIM, HIDDEN_DIM), jnp.float32, -bound1, bound1)
    b1 = jax.random.uniform(k2, (1, HIDDEN_DIM), jnp.float32, -bound1, bound1)
    w2 = jax.random.uniform(k3, (HIDDEN_DIM, ACTION_DIM), jnp.float32, -bound2, bound2)
    b2 = jax.random.uniform(k4, (1, ACTION_DIM), jnp.float32, -bound2, bound2)
    return w1, b1, w2, b2


if __name__ == "__main__":
    key = jax.random.PRNGKey(0)
    k_params, k_x = jax.random.split(key)

    w1, b1, w2, b2 = init_params(k_params)
    params = pack_params(w1, b1, w2, b2)  # pack once, reuse across calls

    # Small sanity batch.
    batch = 8
    x = jax.random.normal(k_x, (batch, STATE_DIM), jnp.float32)
    out = jax.block_until_ready(qvalue_net_forward_packed(x, params))
    ref = jnp.maximum(x @ w1 + b1, 0.0) @ w2 + b2
    assert out.shape == (batch, ACTION_DIM)
    assert jnp.allclose(out, ref, atol=1e-5, rtol=1e-5)

    # Larger, multi-tile batch (typical DQN replay batch / vectorized envs),
    # with a non-multiple-of-tile size to exercise the batch-padding path and
    # the >=2-step parallel grid.
    big_x = jax.random.normal(jax.random.PRNGKey(1), (1000, STATE_DIM), jnp.float32)
    big_out = jax.block_until_ready(qvalue_net_forward_packed(big_x, params))
    big_ref = jnp.maximum(big_x @ w1 + b1, 0.0) @ w2 + b2
    assert big_out.shape == (1000, ACTION_DIM)
    assert jnp.allclose(big_out, big_ref, atol=1e-4, rtol=1e-4)

    print("KERNEL_OK")
</pallas_src>

<mosaic_0001>
module attributes {stable_mosaic.version = 11 : i64} {
  func.func @qvaluenet_kernel(%arg0: i32, %arg1: memref<8x4xf32, #tpu.memory_space<vmem>>, %arg2: memref<152x128xf32, #tpu.memory_space<vmem>>, %arg3: memref<8x8xf32, #tpu.memory_space<vmem>>) attributes {dimension_semantics = [#tpu.dimension_semantics<parallel>], iteration_bounds = array<i64: 1>, scalar_prefetch = 0 : i64, scratch_operands = 0 : i64, tpu.core_type = #tpu.core_type<tc>, window_params = [{transform_indices = @transform_0, window_bounds = array<i64: 8, 4>}, {pipeline_mode = #tpu.pipeline_mode<synchronous>, transform_indices = @transform_1, window_bounds = array<i64: 152, 128>}, {transform_indices = @transform_2, window_bounds = array<i64: 8, 8>}]} {
    %c0 = arith.constant 0 : index
    %c0_0 = arith.constant 0 : index
    %0 = vector.load %arg2[%c0, %c0_0] : memref<152x128xf32, #tpu.memory_space<vmem>>, vector<4x128xf32>
    %c8 = arith.constant 8 : index
    %c0_1 = arith.constant 0 : index
    %1 = vector.load %arg2[%c8, %c0_1] : memref<152x128xf32, #tpu.memory_space<vmem>>, vector<1x128xf32>
    %c16 = arith.constant 16 : index
    %c0_2 = arith.constant 0 : index
    %2 = vector.load %arg2[%c16, %c0_2] : memref<152x128xf32, #tpu.memory_space<vmem>>, vector<128x128xf32>
    %c144 = arith.constant 144 : index
    %c0_3 = arith.constant 0 : index
    %3 = vector.load %arg2[%c144, %c0_3] : memref<152x128xf32, #tpu.memory_space<vmem>>, vector<1x128xf32>
    %c0_4 = arith.constant 0 : index
    %c0_5 = arith.constant 0 : index
    %4 = vector.load %arg1[%c0_4, %c0_5] : memref<8x4xf32, #tpu.memory_space<vmem>>, vector<8x4xf32>
    %cst = arith.constant dense<0.000000e+00> : vector<8x128xf32>
    %5 = tpu.matmul %4, %0, %cst {dimension_numbers = #tpu.dot_dimension_numbers<[1], [0], [0], [1], [0, 0, 1, 1], [], []>} : vector<8x4xf32>, vector<4x128xf32>, vector<8x128xf32> -> vector<8x128xf32>
    %6 = vector.broadcast %1 : vector<1x128xf32> to vector<8x128xf32>
    %7 = arith.addf %5, %6 : vector<8x128xf32>
    %cst_6 = arith.constant 0.000000e+00 : f32
    %8 = vector.broadcast %cst_6 : f32 to vector<8x128xf32>
    %9 = arith.maximumf %7, %8 : vector<8x128xf32>
    %cst_7 = arith.constant dense<0.000000e+00> : vector<8x128xf32>
    %10 = tpu.matmul %9, %2, %cst_7 {dimension_numbers = #tpu.dot_dimension_numbers<[1], [0], [0], [1], [0, 0, 1, 1], [], []>} : vector<8x128xf32>, vector<128x128xf32>, vector<8x128xf32> -> vector<8x128xf32>
    %11 = vector.broadcast %3 : vector<1x128xf32> to vector<8x128xf32>
    %12 = arith.addf %10, %11 : vector<8x128xf32>
    %13 = vector.extract_strided_slice %12 {offsets = [0, 0], sizes = [8, 8], strides = [1, 1]} : vector<8x128xf32> to vector<8x8xf32>
    %c0_8 = arith.constant 0 : index
    %c0_9 = arith.constant 0 : index
    %14 = vector.load %arg3[%c0_8, %c0_9] : memref<8x8xf32, #tpu.memory_space<vmem>>, vector<8x8xf32>
    tpu.vector_store %arg3[%c0_8, %c0_9], %13 {strides = array<i32>} : memref<8x8xf32, #tpu.memory_space<vmem>>, vector<8x8xf32>,
    return
  }
  func.func @transform_0(%arg0: i32) -> (i32, i32) {
    %c0_i32 = arith.constant 0 : i32
    %c0_i32_0 = arith.constant 0 : i32
    return %arg0, %c0_i32 : i32, i32
  }
  func.func @transform_1(%arg0: i32) -> (i32, i32) {
    %c0_i32 = arith.constant 0 : i32
    %c0_i32_0 = arith.constant 0 : i32
    %c0_i32_1 = arith.constant 0 : i32
    return %c0_i32, %c0_i32_0 : i32, i32
  }
  func.func @transform_2(%arg0: i32) -> (i32, i32) {
    %c0_i32 = arith.constant 0 : i32
    %c0_i32_0 = arith.constant 0 : i32
    return %arg0, %c0_i32 : i32, i32
  }
}

</mosaic_0001>

<bundles_post_ra>
// kernel: tpu_custom_call.1
= control target key start
LH: loop header
LB: loop body
LE: loop exit
PB: predicated region body
PF: predicated region fallthrough
CT: control target
= control target key end

     0   :  { %7 = vsyncpa [#allocation3], 0  ;;  %s206_s0 = inlined_call_operand.vmem [shape: f32[8,4], index: 0, kind: input, shape index: {}]   ;;  %s207_s1 = inlined_call_operand.hbm [shape: f32[152,128], index: 1, kind: input, shape index: {}]   ;;  %s208_s2 = inlined_call_operand.hbm [shape: f32[8,8], index: 2, kind: output, shape index: {}]  }
   0x1   :  { %8 = vsyncpa [#allocation4], 0  ;;  %s15_s11 = sshll.u32 %s207_s1, 4  ;;  %s178_s12 = smov [#allocation2]   ;;  %s16_s11 = int_to_ptr.hbm [resolvable:$true] %s15_s11 }
   0x2   :  { %s17_s13 = sshll.u32 %s178_s12, 4  ;;  %s179_s14 = smov 128   ;;  %s18_s13 = int_to_ptr.vmem [resolvable:$true] %s17_s13 }
   0x3   :  { %s180_s15 = smov 8  }
   0x4   :  { %23 = dma.hbm_to_vmem [thread:$0]  %s16_s11, 2432, %s18_s13, [#allocation3], %s179_s14, %s179_s14, %s180_s15  }
   0x5   :  { %174 = dma.done.wait [#allocation3], 2432  }
   0x6   :  { %175 = vsyncadd [#allocation3], 4294964864  ;;  %vm53_vm0 = vcmask 1043456   ;;  %vm49_vm1 = vcmask 31744   ;;  %v28_v0 = vld [vmem:[#allocation2] sm:$0xf] }
   0x7   :  { %v47_v1 = vld [vmem:[%s206_s0] sm:$0xff]  ;;  %v45_v2 = vld [vmem:[#allocation2 + $0x88] sm:$0xff]  ;;  %118 = vmatpush.msk.msra.mxu0 %vm53_vm0, %v28_v0  ;;  %v43_v4 = vld [vmem:[#allocation2 + $0x78] sm:$0xff]  ;;  %s181_s0 = smov [#allocation5]   ;;  %s108_s20 = sshll.u32 %s208_s2, 4  ;;  %vm99_vm2 = vcmask 64512   ;;  %s109_s20 = int_to_ptr.hbm [resolvable:$true] %s108_s20 }
   0x8   :  { %79 = vmatpush.msra.mxu1 %v45_v2  ;;  %v44_v3 = vld [vmem:[#allocation2 + $0x80] sm:$0xff]  ;;  %119 = vmatmul.msk.f32.vlgmr.msra.gmra.mxu0 %vm49_vm1, %v47_v1  ;;  %v42_v5 = vld [vmem:[#allocation2 + $0x70] sm:$0xff]  ;;  %v41_v6 = vld [vmem:[#allocation2 + $0x68] sm:$0xff]  ;;  %s106_s1 = sshll.u32 %s181_s0, 4  ;;  %s107_s1 = int_to_ptr.vmem [resolvable:$true] %s106_s1 }
   0x9   :  { %v40_v7 = vld [vmem:[#allocation2 + $0x60] sm:$0xff]  ;;  %v39_v8 = vld [vmem:[#allocation2 + $0x58] sm:$0xff]  ;;  %v38_v9 = vld [vmem:[#allocation2 + $0x50] sm:$0xff] }
   0xa   :  { %80 = vmatpush.msra.mxu1 %v44_v3  ;;  %v37_v10 = vld [vmem:[#allocation2 + $0x48] sm:$0xff]  ;;  %v36_v11 = vld [vmem:[#allocation2 + $0x40] sm:$0xff]  ;;  %v35_v12 = vld [vmem:[#allocation2 + $0x38] sm:$0xff] }
   0xb   :  { %v34_v13 = vld [vmem:[#allocation2 + $0x30] sm:$0xff]  ;;  %v33_v14 = vld [vmem:[#allocation2 + $0x28] sm:$0xff]  ;;  %v32_v15 = vld [vmem:[#allocation2 + $0x20] sm:$0xff] }
   0xc   :  { %81 = vmatpush.msra.mxu1 %v43_v4  ;;  %v31_v16 = vld [vmem:[#allocation2 + $0x18] sm:$0xff]  ;;  %v30_v17 = vld [vmem:[#allocation2 + $0x10] sm:$0xff]  ;;  %v124_v18 = vld [vmem:[#allocation2 + $0x8] ss:$0 sm:$0xff] }
   0xd   :  { %v125_v22 = vld [vmem:[#allocation2 + $0x90] ss:$0 sm:$0xff] }
   0xe   :  { %82 = vmatpush.msra.mxu1 %v42_v5 }
  0x10   :  { %83 = vmatpush.msra.mxu1 %v41_v6 }
  0x12   :  { %84 = vmatpush.msra.mxu1 %v40_v7 }
  0x14   :  { %85 = vmatpush.msra.mxu1 %v39_v8 }
  0x16   :  { %86 = vmatpush.msra.mxu1 %v38_v9 }
  0x18   :  { %87 = vmatpush.msra.mxu1 %v37_v10 }
  0x1a   :  { %88 = vmatpush.msra.mxu1 %v36_v11 }
  0x1c   :  { %89 = vmatpush.msra.mxu1 %v35_v12 }
  0x1e   :  { %90 = vmatpush.msra.mxu1 %v34_v13 }
  0x20   :  { %91 = vmatpush.msra.mxu1 %v33_v14 }
  0x22   :  { %92 = vmatpush.msra.mxu1 %v32_v15 }
  0x24   :  { %93 = vmatpush.msra.mxu1 %v31_v16 }
  0x26   :  { %94 = vmatpush.msra.mxu1 %v30_v17 }
  0x85   :  { %v74_v19 = vpop.f32.mrf.mxu0 }
  0x86   :  { %v75_v20 = vadd.f32 %v124_v18, %v74_v19 }
  0x88   :  { %v77_v21 = vmax.f32 %v75_v20, 0.0 }
  0x8a   :  { %95 = vmatmul.f32.vlgmr.msra.gmra.mxu1 %v77_v21 }
 0x107   :  { %v96_v23 = vpop.f32.mrf.mxu1 }
 0x108   :  { %v97_v24 = vadd.f32 %v125_v22, %v96_v23 }
 0x10a   :  { %100 = vst.msk [vmem:[#allocation5] sm:$0xff] %vm99_vm2, %v97_v24 }
 0x10b   :  { %111 = dma.vmem_to_hbm [thread:$0]  %s107_s1, 128, %s109_s20, [#allocation4]  }
 0x10c   :  { %176 = dma.done.wait [#allocation4], 128  }
 0x10d   :  { %177 = vsyncadd [#allocation4], 4294967168 }
 0x10e   :  { %116 = vsyncpa [#allocation3], 1 }
 0x10f   :  { %117 = vsyncpa [#allocation4], 1 }

</bundles_post_ra>
